<compile_context>
chip_gen: v5e
topology: v5e:2x2
jax: 0.10.0
libtpu: 0.0.40
codegen_flags: <defaults>
</compile_context>

<pallas_src>
import functools

import jax
import jax.numpy as jnp
from jax.experimental import pallas as pl
from jax.experimental.pallas import tpu as pltpu

_LANE = 128
_SUBLANE = 8


def _mlp_kernel(x_ref,
                w1_ref, b1_ref,
                w2_ref, b2_ref,
                w3_ref, b3_ref,
                w4_ref, b4_ref,
                o_ref):
    """Fused 4-layer MLP for one batch tile. All operands resident in VMEM.

    x arrives f32 and is cast to bf16 in-kernel (free, DMA-bound kernel).
    Matmuls are bf16 with f32 accumulation; bias add and ReLU run in f32;
    intermediate activations are downcast to bf16 before the next dot.
    """
    x = x_ref[...].astype(jnp.bfloat16)  # (tile_b, in_features)

    # fc1 + ReLU  (dropout is identity in eval mode)
    h = jnp.dot(x, w1_ref[...], preferred_element_type=jnp.float32) + b1_ref[...]
    h = jnp.maximum(h, 0.0).astype(jnp.bfloat16)

    # fc2 + ReLU
    h = jnp.dot(h, w2_ref[...], preferred_element_type=jnp.float32) + b2_ref[...]
    h = jnp.maximum(h, 0.0).astype(jnp.bfloat16)

    # fc3 + ReLU
    h = jnp.dot(h, w3_ref[...], preferred_element_type=jnp.float32) + b3_ref[...]
    h = jnp.maximum(h, 0.0).astype(jnp.bfloat16)

    # fc4 (no activation); output is the true (unpadded) out_features width.
    y = jnp.dot(h, w4_ref[...], preferred_element_type=jnp.float32) + b4_ref[...]

    o_ref[...] = y.astype(o_ref.dtype)


def _round_up(n, m):
    return ((n + m - 1) // m) * m


def _pad2(a, rows, cols):
    r, c = a.shape
    return jnp.pad(a, ((0, rows - r), (0, cols - c)))


@functools.partial(jax.jit, static_argnames=("block_b",))
def simple_neural_net(x, params, *, block_b=1024):
    """x: (B, in_features) float32.  params: dict of w1..w4 (fan_in, fan_out)
    and b1..b4 (1, fan_out), all float32. Returns (B, out_features) float32."""
    B, in_features = x.shape
    out_features = params["w4"].shape[1]
    h1 = params["w1"].shape[1]
    h2 = params["w2"].shape[1]
    h3 = params["w3"].shape[1]

    # Hidden widths padded to exactly one lane-width (128): lane-dense
    # activations, zero-pad is exact through ReLU. Output is NOT padded.
    H1 = _round_up(h1, _LANE)
    H2 = _round_up(h2, _LANE)
    H3 = _round_up(h3, _LANE)

    # bf16 weights for full-rate MXU; biases stay f32 so elementwise work
    # (bias add, ReLU) runs in f32 (no bf16 VPU penalty on v5e).
    w1 = _pad2(params["w1"], in_features, H1).astype(jnp.bfloat16)
    w2 = _pad2(params["w2"], H1, H2).astype(jnp.bfloat16)
    w3 = _pad2(params["w3"], H2, H3).astype(jnp.bfloat16)
    w4 = _pad2(params["w4"], H3, out_features).astype(jnp.bfloat16)  # narrow N
    b1 = _pad2(params["b1"], 1, H1).astype(jnp.float32)
    b2 = _pad2(params["b2"], 1, H2).astype(jnp.float32)
    b3 = _pad2(params["b3"], 1, H3).astype(jnp.float32)
    b4 = params["b4"].astype(jnp.float32)                             # (1, out)

    # Batch tile: user block_b rounded up to a multiple of 8; additionally
    # capped at ~half of the (8-rounded) batch so the grid keeps >= 2 steps
    # when B allows (lets v7x shard the "parallel" axis across its 2 TCs).
    block_b = max(_SUBLANE, _round_up(block_b, _SUBLANE))
    half_b = max(_SUBLANE, _round_up(pl.cdiv(_round_up(B, _SUBLANE), 2), _SUBLANE))
    eff_block = min(block_b, half_b)

    # No batch padding: Pallas handles the ragged trailing block (OOB rows of
    # the output block are discarded; rows are independent so padding garbage
    # in the last input block cannot affect valid rows).
    grid = (pl.cdiv(B, eff_block),)

    # Weights/biases are small (<~60 KB total): constant index_map keeps them
    # resident across all grid steps (no re-DMA).
    def full(shape):
        return pl.BlockSpec(shape, lambda i: (0,) * len(shape))

    in_specs = [
        pl.BlockSpec((eff_block, in_features), lambda i: (i, 0)),
        full(w1.shape), full(b1.shape),
        full(w2.shape), full(b2.shape),
        full(w3.shape), full(b3.shape),
        full(w4.shape), full(b4.shape),
    ]
    # Narrow f32 output: last dim equals the full array dim (legal block) and
    # only 4*out_features bytes/row are written back to HBM.
    out_spec = pl.BlockSpec((eff_block, out_features), lambda i: (i, 0))

    y = pl.pallas_call(
        _mlp_kernel,
        out_shape=jax.ShapeDtypeStruct((B, out_features), jnp.float32),
        grid_spec=pltpu.PrefetchScalarGridSpec(
            num_scalar_prefetch=0,
            grid=grid,
            in_specs=in_specs,
            out_specs=out_spec,
        ),
        compiler_params=pltpu.CompilerParams(
            dimension_semantics=("parallel",)),
    )(x, w1, b1, w2, b2, w3, b3, w4, b4)

    return y


def init_params(key, in_features, out_features, hl=(64, 64, 64)):
    """Deterministic Kaiming-uniform-ish init matching nn.Linear shapes."""
    dims = [in_features, hl[0], hl[1], hl[2], out_features]
    params = {}
    for idx in range(4):
        fan_in, fan_out = dims[idx], dims[idx + 1]
        key, kw, kb = jax.random.split(key, 3)
        bound = 1.0 / jnp.sqrt(fan_in)
        # Stored as (fan_in, fan_out) = transpose of torch's (out, in) layout.
        params[f"w{idx + 1}"] = jax.random.uniform(
            kw, (fan_in, fan_out), jnp.float32, -bound, bound)
        params[f"b{idx + 1}"] = jax.random.uniform(
            kb, (1, fan_out), jnp.float32, -bound, bound)
    return params


def _reference_bf16(x, params):
    """Pure-JAX reference mirroring the kernel's bf16-in / f32-accumulate
    numerics (for a tight tolerance check)."""
    def lin(h, w, b):
        return jnp.dot(h.astype(jnp.bfloat16), w.astype(jnp.bfloat16),
                       preferred_element_type=jnp.float32) + b
    h = jnp.maximum(lin(x, params["w1"], params["b1"]), 0.0)
    h = jnp.maximum(lin(h, params["w2"], params["b2"]), 0.0)
    h = jnp.maximum(lin(h, params["w3"], params["b3"]), 0.0)
    return lin(h, params["w4"], params["b4"])


if __name__ == "__main__":
    in_features, out_features = 32, 8

    key = jax.random.PRNGKey(0)
    key, kparams = jax.random.split(key)
    params = init_params(kparams, in_features, out_features)

    # Small test (single grid step, tiny tile).
    batch = 8
    key, kx = jax.random.split(key)
    x = jax.random.normal(kx, (batch, in_features), jnp.float32)
    y = simple_neural_net(x, params)
    jax.block_until_ready(y)
    y_ref = _reference_bf16(x, params)
    assert y.shape == (batch, out_features)
    assert jnp.allclose(y, y_ref, atol=1e-3, rtol=1e-3), "mismatch (small batch)"

    # Ragged, multi-tile test (exercises grid > 1 and a partial trailing block).
    batch2 = 300
    key, kx2 = jax.random.split(key)
    x2 = jax.random.normal(kx2, (batch2, in_features), jnp.float32)
    y2 = simple_neural_net(x2, params)
    jax.block_until_ready(y2)
    y2_ref = _reference_bf16(x2, params)
    assert y2.shape == (batch2, out_features)
    assert jnp.allclose(y2, y2_ref, atol=1e-3, rtol=1e-3), "mismatch (ragged batch)"

    print("KERNEL_OK")
</pallas_src>

<mosaic_0001>
module attributes {stable_mosaic.version = 11 : i64} {
  func.func @_mlp_kernel(%arg0: i32, %arg1: memref<8x32xf32, #tpu.memory_space<vmem>>, %arg2: memref<32x128xbf16, #tpu.memory_space<vmem>>, %arg3: memref<1x128xf32, #tpu.memory_space<vmem>>, %arg4: memref<128x128xbf16, #tpu.memory_space<vmem>>, %arg5: memref<1x128xf32, #tpu.memory_space<vmem>>, %arg6: memref<128x128xbf16, #tpu.memory_space<vmem>>, %arg7: memref<1x128xf32, #tpu.memory_space<vmem>>, %arg8: memref<128x8xbf16, #tpu.memory_space<vmem>>, %arg9: memref<1x8xf32, #tpu.memory_space<vmem>>, %arg10: memref<8x8xf32, #tpu.memory_space<vmem>>) attributes {dimension_semantics = [#tpu.dimension_semantics<parallel>], iteration_bounds = array<i64: 1>, scalar_prefetch = 0 : i64, scratch_operands = 0 : i64, tpu.core_type = #tpu.core_type<tc>, window_params = [{transform_indices = @transform_0, window_bounds = array<i64: 8, 32>}, {pipeline_mode = #tpu.pipeline_mode<synchronous>, transform_indices = @transform_1, window_bounds = array<i64: 32, 128>}, {pipeline_mode = #tpu.pipeline_mode<synchronous>, transform_indices = @transform_2, window_bounds = array<i64: 1, 128>}, {pipeline_mode = #tpu.pipeline_mode<synchronous>, transform_indices = @transform_3, window_bounds = array<i64: 128, 128>}, {pipeline_mode = #tpu.pipeline_mode<synchronous>, transform_indices = @transform_4, window_bounds = array<i64: 1, 128>}, {pipeline_mode = #tpu.pipeline_mode<synchronous>, transform_indices = @transform_5, window_bounds = array<i64: 128, 128>}, {pipeline_mode = #tpu.pipeline_mode<synchronous>, transform_indices = @transform_6, window_bounds = array<i64: 1, 128>}, {pipeline_mode = #tpu.pipeline_mode<synchronous>, transform_indices = @transform_7, window_bounds = array<i64: 128, 8>}, {pipeline_mode = #tpu.pipeline_mode<synchronous>, transform_indices = @transform_8, window_bounds = array<i64: 1, 8>}, {transform_indices = @transform_9, window_bounds = array<i64: 8, 8>}]} {
    %c0 = arith.constant 0 : index
    %c0_0 = arith.constant 0 : index
    %0 = vector.load %arg1[%c0, %c0_0] : memref<8x32xf32, #tpu.memory_space<vmem>>, vector<8x32xf32>
    %1 = arith.truncf %0 : vector<8x32xf32> to vector<8x32xbf16>
    %c0_1 = arith.constant 0 : index
    %c0_2 = arith.constant 0 : index
    %2 = vector.load %arg2[%c0_1, %c0_2] : memref<32x128xbf16, #tpu.memory_space<vmem>>, vector<32x128xbf16>
    %cst = arith.constant dense<0.000000e+00> : vector<8x128xf32>
    %3 = tpu.matmul %1, %2, %cst {dimension_numbers = #tpu.dot_dimension_numbers<[1], [0], [0], [1], [0, 0, 1, 1], [], []>} : vector<8x32xbf16>, vector<32x128xbf16>, vector<8x128xf32> -> vector<8x128xf32>
    %c0_3 = arith.constant 0 : index
    %c0_4 = arith.constant 0 : index
    %4 = vector.load %arg3[%c0_3, %c0_4] : memref<1x128xf32, #tpu.memory_space<vmem>>, vector<1x128xf32>
    %5 = vector.broadcast %4 : vector<1x128xf32> to vector<8x128xf32>
    %6 = arith.addf %3, %5 : vector<8x128xf32>
    %cst_5 = arith.constant 0.000000e+00 : f32
    %7 = vector.broadcast %cst_5 : f32 to vector<8x128xf32>
    %8 = arith.maximumf %6, %7 : vector<8x128xf32>
    %9 = arith.truncf %8 : vector<8x128xf32> to vector<8x128xbf16>
    %c0_6 = arith.constant 0 : index
    %c0_7 = arith.constant 0 : index
    %10 = vector.load %arg4[%c0_6, %c0_7] : memref<128x128xbf16, #tpu.memory_space<vmem>>, vector<128x128xbf16>
    %cst_8 = arith.constant dense<0.000000e+00> : vector<8x128xf32>
    %11 = tpu.matmul %9, %10, %cst_8 {dimension_numbers = #tpu.dot_dimension_numbers<[1], [0], [0], [1], [0, 0, 1, 1], [], []>} : vector<8x128xbf16>, vector<128x128xbf16>, vector<8x128xf32> -> vector<8x128xf32>
    %c0_9 = arith.constant 0 : index
    %c0_10 = arith.constant 0 : index
    %12 = vector.load %arg5[%c0_9, %c0_10] : memref<1x128xf32, #tpu.memory_space<vmem>>, vector<1x128xf32>
    %13 = vector.broadcast %12 : vector<1x128xf32> to vector<8x128xf32>
    %14 = arith.addf %11, %13 : vector<8x128xf32>
    %cst_11 = arith.constant 0.000000e+00 : f32
    %15 = vector.broadcast %cst_11 : f32 to vector<8x128xf32>
    %16 = arith.maximumf %14, %15 : vector<8x128xf32>
    %17 = arith.truncf %16 : vector<8x128xf32> to vector<8x128xbf16>
    %c0_12 = arith.constant 0 : index
    %c0_13 = arith.constant 0 : index
    %18 = vector.load %arg6[%c0_12, %c0_13] : memref<128x128xbf16, #tpu.memory_space<vmem>>, vector<128x128xbf16>
    %cst_14 = arith.constant dense<0.000000e+00> : vector<8x128xf32>
    %19 = tpu.matmul %17, %18, %cst_14 {dimension_numbers = #tpu.dot_dimension_numbers<[1], [0], [0], [1], [0, 0, 1, 1], [], []>} : vector<8x128xbf16>, vector<128x128xbf16>, vector<8x128xf32> -> vector<8x128xf32>
    %c0_15 = arith.constant 0 : index
    %c0_16 = arith.constant 0 : index
    %20 = vector.load %arg7[%c0_15, %c0_16] : memref<1x128xf32, #tpu.memory_space<vmem>>, vector<1x128xf32>
    %21 = vector.broadcast %20 : vector<1x128xf32> to vector<8x128xf32>
    %22 = arith.addf %19, %21 : vector<8x128xf32>
    %cst_17 = arith.constant 0.000000e+00 : f32
    %23 = vector.broadcast %cst_17 : f32 to vector<8x128xf32>
    %24 = arith.maximumf %22, %23 : vector<8x128xf32>
    %25 = arith.truncf %24 : vector<8x128xf32> to vector<8x128xbf16>
    %c0_18 = arith.constant 0 : index
    %c0_19 = arith.constant 0 : index
    %26 = vector.load %arg8[%c0_18, %c0_19] : memref<128x8xbf16, #tpu.memory_space<vmem>>, vector<128x8xbf16>
    %cst_20 = arith.constant dense<0.000000e+00> : vector<8x8xf32>
    %27 = tpu.matmul %25, %26, %cst_20 {dimension_numbers = #tpu.dot_dimension_numbers<[1], [0], [0], [1], [0, 0, 1, 1], [], []>} : vector<8x128xbf16>, vector<128x8xbf16>, vector<8x8xf32> -> vector<8x8xf32>
    %c0_21 = arith.constant 0 : index
    %c0_22 = arith.constant 0 : index
    %28 = vector.load %arg9[%c0_21, %c0_22] : memref<1x8xf32, #tpu.memory_space<vmem>>, vector<1x8xf32>
    %29 = vector.broadcast %28 : vector<1x8xf32> to vector<8x8xf32>
    %30 = arith.addf %27, %29 : vector<8x8xf32>
    %c0_23 = arith.constant 0 : index
    %c0_24 = arith.constant 0 : index
    %31 = vector.load %arg10[%c0_23, %c0_24] : memref<8x8xf32, #tpu.memory_space<vmem>>, vector<8x8xf32>
    tpu.vector_store %arg10[%c0_23, %c0_24], %30 {strides = array<i32>} : memref<8x8xf32, #tpu.memory_space<vmem>>, vector<8x8xf32>,
    return
  }
  func.func @transform_0(%arg0: i32) -> (i32, i32) {
    %c0_i32 = arith.constant 0 : i32
    %c0_i32_0 = arith.constant 0 : i32
    return %arg0, %c0_i32 : i32, i32
  }
  func.func @transform_1(%arg0: i32) -> (i32, i32) {
    %c0_i32 = arith.constant 0 : i32
    %c0_i32_0 = arith.constant 0 : i32
    %c0_i32_1 = arith.constant 0 : i32
    return %c0_i32, %c0_i32_0 : i32, i32
  }
  func.func @transform_2(%arg0: i32) -> (i32, i32) {
    %c0_i32 = arith.constant 0 : i32
    %c0_i32_0 = arith.constant 0 : i32
    %c0_i32_1 = arith.constant 0 : i32
    return %c0_i32, %c0_i32_0 : i32, i32
  }
  func.func @transform_3(%arg0: i32) -> (i32, i32) {
    %c0_i32 = arith.constant 0 : i32
    %c0_i32_0 = arith.constant 0 : i32
    %c0_i32_1 = arith.constant 0 : i32
    return %c0_i32, %c0_i32_0 : i32, i32
  }
  func.func @transform_4(%arg0: i32) -> (i32, i32) {
    %c0_i32 = arith.constant 0 : i32
    %c0_i32_0 = arith.constant 0 : i32
    %c0_i32_1 = arith.constant 0 : i32
    return %c0_i32, %c0_i32_0 : i32, i32
  }
  func.func @transform_5(%arg0: i32) -> (i32, i32) {
    %c0_i32 = arith.constant 0 : i32
    %c0_i32_0 = arith.constant 0 : i32
    %c0_i32_1 = arith.constant 0 : i32
    return %c0_i32, %c0_i32_0 : i32, i32
  }
  func.func @transform_6(%arg0: i32) -> (i32, i32) {
    %c0_i32 = arith.constant 0 : i32
    %c0_i32_0 = arith.constant 0 : i32
    %c0_i32_1 = arith.constant 0 : i32
    return %c0_i32, %c0_i32_0 : i32, i32
  }
  func.func @transform_7(%arg0: i32) -> (i32, i32) {
    %c0_i32 = arith.constant 0 : i32
    %c0_i32_0 = arith.constant 0 : i32
    %c0_i32_1 = arith.constant 0 : i32
    return %c0_i32, %c0_i32_0 : i32, i32
  }
  func.func @transform_8(%arg0: i32) -> (i32, i32) {
    %c0_i32 = arith.constant 0 : i32
    %c0_i32_0 = arith.constant 0 : i32
    %c0_i32_1 = arith.constant 0 : i32
    return %c0_i32, %c0_i32_0 : i32, i32
  }
  func.func @transform_9(%arg0: i32) -> (i32, i32) {
    %c0_i32 = arith.constant 0 : i32
    %c0_i32_0 = arith.constant 0 : i32
    return %arg0, %c0_i32 : i32, i32
  }
}

</mosaic_0001>

<bundles_post_ra>
// kernel: simple_neural_net.1
= control target key start
LH: loop header
LB: loop body
LE: loop exit
PB: predicated region body
PF: predicated region fallthrough
CT: control target
= control target key end

     0   :  { %s649_s0 = inlined_call_operand.vmem [shape: f32[8,32], index: 0, kind: input, shape index: {}]   ;;  %s650_s1 = inlined_call_operand.vmem [shape: bf16[32,128], index: 1, kind: input, shape index: {}]   ;;  %s651_s2 = inlined_call_operand.vmem [shape: f32[1,128], index: 2, kind: input, shape index: {}]   ;;  %s652_s3 = inlined_call_operand.vmem [shape: bf16[128,128], index: 3, kind: input, shape index: {}]   ;;  %s653_s4 = inlined_call_operand.vmem [shape: f32[1,128], index: 4, kind: input, shape index: {}]   ;;  %s654_s5 = inlined_call_operand.vmem [shape: bf16[128,128], index: 5, kind: input, shape index: {}]   ;;  %s655_s6 = inlined_call_operand.vmem [shape: f32[1,128], index: 6, kind: input, shape index: {}]   ;;  %s656_s7 = inlined_call_operand.vmem [shape: bf16[128,8], index: 7, kind: input, shape index: {}]   ;;  %s657_s8 = inlined_call_operand.vmem [shape: f32[1,8], index: 8, kind: input, shape index: {}]   ;;  %s658_s9 = inlined_call_operand.hbm [shape: f32[8,8], index: 9, kind: output, shape index: {}]  }
   0x1   :  { %v446_v0 = vld [vmem:[%s650_s1 + $0x8] sm:$0xff]  ;;  %v454_v1 = vld [vmem:[%s652_s3 + $0x38] sm:$0xff]  ;;  %v445_v2 = vld [vmem:[%s650_s1] sm:$0xff] }
   0x2   :  { %66 = vmatpush.bf16.msra.mxu0 %v446_v0  ;;  %v34_v3 = vld [vmem:[%s649_s0] sm:$0xff]  ;;  %143 = vmatpush.bf16.msra.mxu1 %v454_v1  ;;  %v453_v4 = vld [vmem:[%s652_s3 + $0x30] sm:$0xff] }
   0x3   :  { %14 = vsyncpa [#allocation3], 0  ;;  %v35_v5 = vpack.c.bf16 %v34_v3, %v34_v3  ;;  %vm56_vm0 = vcmask 261120   ;;  %v452_v6 = vld [vmem:[%s652_s3 + $0x28] sm:$0xff]  ;;  %v451_v7 = vld [vmem:[%s652_s3 + $0x20] sm:$0xff]  ;;  %s502_s20 = smov [#allocation2]  }
   0x4   :  { %v450_v8 = vld [vmem:[%s652_s3 + $0x18] sm:$0xff]  ;;  %v449_v9 = vld [vmem:[%s652_s3 + $0x10] sm:$0xff]  ;;  %v448_v10 = vld [vmem:[%s652_s3 + $0x8] sm:$0xff]  ;;  %s329_s1 = sshll.u32 %s502_s20, 4  ;;  %vm322_vm1 = vcmask 64512   ;;  %s330_s1 = int_to_ptr.vmem [resolvable:$true] %s329_s1 }
   0x5   :  { %v447_v11 = vld [vmem:[%s652_s3] sm:$0xff]  ;;  %v462_v12 = vld [vmem:[%s654_s5 + $0x38] sm:$0xff]  ;;  %v461_v13 = vld [vmem:[%s654_s5 + $0x30] sm:$0xff] }
   0x6   :  { %67 = vmatpush.bf16.msra.mxu0 %v445_v2  ;;  %144 = vmatpush.bf16.msra.mxu1 %v453_v4  ;;  %v460_v14 = vld [vmem:[%s654_s5 + $0x28] sm:$0xff]  ;;  %v459_v15 = vld [vmem:[%s654_s5 + $0x20] sm:$0xff]  ;;  %v458_v16 = vld [vmem:[%s654_s5 + $0x18] sm:$0xff] }
   0x7   :  { %226 = vmatpush.bf16.msra.mxu2 %v462_v12  ;;  %v457_v17 = vld [vmem:[%s654_s5 + $0x10] sm:$0xff]  ;;  %v472_v18 = vld [vmem:[%s651_s2] ss:$0 sm:$0xff]  ;;  %v456_v24 = vld [vmem:[%s654_s5 + $0x8] sm:$0xff] }
   0x8   :  { %v455_v25 = vld [vmem:[%s654_s5] sm:$0xff]  ;;  %v470_v26 = vld [vmem:[%s656_s7 + $0x38] sm:$0xff]  ;;  %v469_v27 = vld [vmem:[%s656_s7 + $0x30] sm:$0xff] }
   0x9   :  { %348 = vmatmul.msk.bf16.vlgmr.msra.gmra.mxu0 %vm56_vm0, %v35_v5  ;;  %309 = vmatpush.bf16.msra.mxu3 %v470_v26  ;;  %v468_v28 = vld [vmem:[%s656_s7 + $0x28] sm:$0xff]  ;;  %v467_v29 = vld [vmem:[%s656_s7 + $0x20] sm:$0xff]  ;;  %v466_v30 = vld [vmem:[%s656_s7 + $0x18] sm:$0xff] }
   0xa   :  { %145 = vmatpush.bf16.msra.mxu1 %v452_v6  ;;  %v465_v31 = vld [vmem:[%s656_s7 + $0x10] sm:$0xff]  ;;  %v473_v32 = vld [vmem:[%s653_s4] ss:$0 sm:$0xff]  ;;  %v464_v38 = vld [vmem:[%s656_s7 + $0x8] sm:$0xff] }
   0xb   :  { %227 = vmatpush.bf16.msra.mxu2 %v461_v13  ;;  %v463_v39 = vld [vmem:[%s656_s7] sm:$0xff]  ;;  %s331_s7 = sshll.u32 %s658_s9, 4  ;;  %s332_s7 = int_to_ptr.hbm [resolvable:$true] %s331_s7 }
   0xc   :  { %v474_v40 = vld [vmem:[%s655_s6] ss:$0 sm:$0xff] }
   0xd   :  { %310 = vmatpush.bf16.msra.mxu3 %v469_v27  ;;  %v475_v46 = vld [vmem:[%s657_s8] ss:$0 sm:$0xff] }
   0xe   :  { %146 = vmatpush.bf16.msra.mxu1 %v451_v7 }
   0xf   :  { %228 = vmatpush.bf16.msra.mxu2 %v460_v14 }
  0x11   :  { %311 = vmatpush.bf16.msra.mxu3 %v468_v28 }
  0x12   :  { %147 = vmatpush.bf16.msra.mxu1 %v450_v8 }
  0x13   :  { %229 = vmatpush.bf16.msra.mxu2 %v459_v15 }
  0x15   :  { %312 = vmatpush.bf16.msra.mxu3 %v467_v29 }
  0x16   :  { %148 = vmatpush.bf16.msra.mxu1 %v449_v9 }
  0x17   :  { %230 = vmatpush.bf16.msra.mxu2 %v458_v16 }
  0x19   :  { %313 = vmatpush.bf16.msra.mxu3 %v466_v30 }
  0x1a   :  { %149 = vmatpush.bf16.msra.mxu1 %v448_v10 }
  0x1b   :  { %231 = vmatpush.bf16.msra.mxu2 %v457_v17 }
  0x1d   :  { %314 = vmatpush.bf16.msra.mxu3 %v465_v31 }
  0x1e   :  { %150 = vmatpush.bf16.msra.mxu1 %v447_v11 }
  0x1f   :  { %232 = vmatpush.bf16.msra.mxu2 %v456_v24 }
  0x21   :  { %315 = vmatpush.bf16.msra.mxu3 %v464_v38 }
  0x23   :  { %233 = vmatpush.bf16.msra.mxu2 %v455_v25 }
  0x25   :  { %316 = vmatpush.bf16.msra.mxu3 %v463_v39 }
  0x86   :  { %v69_v19 = vpop.f32.mrf.mxu0 }
  0x87   :  { %v70_v20 = vadd.f32 %v472_v18, %v69_v19 }
  0x89   :  { %v73_v21 = vmax.f32 %v70_v20, 0.0 }
  0x8b   :  { %v74_v22 = vpack.c.bf16 %v73_v21, %v73_v21 }
  0x8d   :  { %151 = vmatmul.bf16.vlgmr.msra.gmra.mxu1 %v74_v22 }
  0x8e   :  { %v71_v23 = vpop.f32.mrf.mxu0 }
 0x10a   :  { %v152_v33 = vpop.f32.mrf.mxu1 }
 0x10b   :  { %v153_v34 = vadd.f32 %v473_v32, %v152_v33 }
 0x10d   :  { %v156_v35 = vmax.f32 %v153_v34, 0.0 }
 0x10f   :  { %v157_v36 = vpack.c.bf16 %v156_v35, %v156_v35 }
 0x111   :  { %234 = vmatmul.bf16.vlgmr.msra.gmra.mxu2 %v157_v36 }
 0x112   :  { %v154_v37 = vpop.f32.mrf.mxu1 }
 0x194   :  { %v235_v41 = vpop.f32.mrf.mxu2 }
 0x195   :  { %v236_v42 = vadd.f32 %v474_v40, %v235_v41 }
 0x197   :  { %v239_v43 = vmax.f32 %v236_v42, 0.0 }
 0x199   :  { %v240_v44 = vpack.c.bf16 %v239_v43, %v239_v43 }
 0x19b   :  { %317 = vmatmul.bf16.vlgmr.msra.gmra.mxu3 %v240_v44 }
 0x19c   :  { %v237_v45 = vpop.f32.mrf.mxu2 }
 0x21e   :  { %v318_v47 = vpop.f32.mrf.mxu3 }
 0x21f   :  { %v319_v48 = vadd.f32 %v475_v46, %v318_v47 }
 0x221   :  { %323 = vst.msk [vmem:[#allocation2] sm:$0xff] %vm322_vm1, %v319_v48 }
 0x222   :  { %334 = dma.vmem_to_hbm [thread:$0]  %s330_s1, 128, %s332_s7, [#allocation3]  }
 0x226   :  { %v320_v49 = vpop.f32.mrf.mxu3 }
 0x227   :  { %500 = dma.done.wait [#allocation3], 128  }
 0x228   :  { %501 = vsyncadd [#allocation3], 4294967168 }
 0x229   :  { %339 = vsyncpa [#allocation3], 1 }

</bundles_post_ra>
